<compile_context>
chip_gen: v6e
topology: v6e:2x2x1
jax: 0.10.0
libtpu: 0.0.40
codegen_flags: <defaults>
</compile_context>

<pallas_src>
import jax
import jax.numpy as jnp
from jax.experimental import pallas as pl
from jax.experimental.pallas import tpu as pltpu


def _linear_kernel(x_ref, w_ref, b_ref, o_ref):
    # Hot path: matmul on the MXU (f32 accumulate) + bias add on the VPU.
    acc = jnp.dot(x_ref[...], w_ref[...], preferred_element_type=jnp.float32)
    o_ref[...] = (acc + b_ref[...]).astype(o_ref.dtype)


def _round_up(n, m):
    return ((n + m - 1) // m) * m


def ocean_feature_regressor(x, w, b, *, tb_max=1024):
    """Forward pass of OceanFeatureRegressor.

    x: (B, ...) with prod(...) == D, or (B, D)
    w: (D, O)   (PyTorch weight is (O, D); pass it transposed)
    b: (O,)
    """
    if x.ndim > 2:
        x = x.reshape(x.shape[0], -1)
    B, D = x.shape
    O = w.shape[1]
    b2 = b.reshape(1, O)

    # Choose a batch tile that is a multiple of 8 (sublane) and <= tb_max.
    # Pad B so the tile divides it evenly (avoids masked partial-tile codegen).
    b8 = _round_up(max(B, 8), 8)
    if b8 <= tb_max:
        TB = b8
        B_pad = b8
    else:
        TB = tb_max
        B_pad = _round_up(B, TB)

    if B_pad != B:
        x = jnp.pad(x, ((0, B_pad - B), (0, 0)))

    grid = (B_pad // TB,)

    itemsize = jnp.dtype(x.dtype).itemsize
    cost = pl.CostEstimate(
        flops=2 * B_pad * D * O,
        transcendentals=0,
        bytes_accessed=(
            B_pad * D * itemsize            # read x
            + D * O * jnp.dtype(w.dtype).itemsize   # read w (once)
            + O * jnp.dtype(b.dtype).itemsize       # read b (once)
            + B_pad * O * itemsize          # write out
        ),
    )

    out = pl.pallas_call(
        _linear_kernel,
        out_shape=jax.ShapeDtypeStruct((B_pad, O), x.dtype),
        grid_spec=pl.GridSpec(
            grid=grid,
            in_specs=[
                # x streams tile-by-tile over the batch axis.
                pl.BlockSpec((TB, D), lambda i: (i, 0)),
                # w / b: constant index maps -> fetched once, VMEM-resident.
                pl.BlockSpec((D, O), lambda i: (0, 0)),
                pl.BlockSpec((1, O), lambda i: (0, 0)),
            ],
            out_specs=pl.BlockSpec((TB, O), lambda i: (i, 0)),
        ),
        compiler_params=pltpu.CompilerParams(
            # Batch tiles are independent -> let megacore (v7x) split them.
            dimension_semantics=("parallel",),
        ),
        cost_estimate=cost,
    )(x, w, b2)

    if B_pad != B:
        out = out[:B]
    return out


def init_params(key, input_dim=128, output_features_dim=3, dtype=jnp.float32):
    """Deterministic init mimicking PyTorch nn.Linear default (U(-1/sqrt(D), 1/sqrt(D)))."""
    kw, kb = jax.random.split(key)
    bound = 1.0 / jnp.sqrt(float(input_dim))
    # PyTorch weight is (O, D); we store it transposed as (D, O) for the kernel.
    w_t = jax.random.uniform(
        kw, (input_dim, output_features_dim), dtype, minval=-bound, maxval=bound
    )
    b = jax.random.uniform(
        kb, (output_features_dim,), dtype, minval=-bound, maxval=bound
    )
    return w_t, b


if __name__ == "__main__":
    key = jax.random.PRNGKey(0)
    k_x, k_p = jax.random.split(key)

    input_dim = 128
    output_features_dim = 3
    batch = 2

    # >2-D input to exercise the flatten path: 4*4*8 = 128 = input_dim
    x = jax.random.normal(k_x, (batch, 4, 4, 8), dtype=jnp.float32)
    w_t, b = init_params(k_p, input_dim, output_features_dim)

    y = ocean_feature_regressor(x, w_t, b)
    y = jax.block_until_ready(y)

    # Sanity check against plain-JAX reference.
    y_ref = x.reshape(batch, -1) @ w_t + b
    assert y.shape == (batch, output_features_dim)
    assert jnp.allclose(y, y_ref, atol=1e-5, rtol=1e-5)

    # Also exercise a larger, ragged batch that spans multiple tiles.
    x_big = jax.random.normal(k_x, (2050, input_dim), dtype=jnp.float32)
    y_big = jax.block_until_ready(ocean_feature_regressor(x_big, w_t, b))
    y_big_ref = x_big @ w_t + b
    assert y_big.shape == (2050, output_features_dim)
    assert jnp.allclose(y_big, y_big_ref, atol=1e-4, rtol=1e-4)

    print("KERNEL_OK")
</pallas_src>

<mosaic_0001>
module attributes {stable_mosaic.version = 11 : i64} {
  func.func @_linear_kernel(%arg0: i32, %arg1: memref<8x128xf32, #tpu.memory_space<vmem>>, %arg2: memref<128x3xf32, #tpu.memory_space<vmem>>, %arg3: memref<1x3xf32, #tpu.memory_space<vmem>>, %arg4: memref<8x3xf32, #tpu.memory_space<vmem>>) attributes {dimension_semantics = [#tpu.dimension_semantics<parallel>], iteration_bounds = array<i64: 1>, scalar_prefetch = 0 : i64, scratch_operands = 0 : i64, tpu.core_type = #tpu.core_type<tc>, window_params = [{transform_indices = @transform_0, window_bounds = array<i64: 8, 128>}, {pipeline_mode = #tpu.pipeline_mode<synchronous>, transform_indices = @transform_1, window_bounds = array<i64: 128, 3>}, {pipeline_mode = #tpu.pipeline_mode<synchronous>, transform_indices = @transform_2, window_bounds = array<i64: 1, 3>}, {transform_indices = @transform_3, window_bounds = array<i64: 8, 3>}]} {
    %c0 = arith.constant 0 : index
    %c0_0 = arith.constant 0 : index
    %0 = vector.load %arg1[%c0, %c0_0] : memref<8x128xf32, #tpu.memory_space<vmem>>, vector<8x128xf32>
    %c0_1 = arith.constant 0 : index
    %c0_2 = arith.constant 0 : index
    %1 = vector.load %arg2[%c0_1, %c0_2] : memref<128x3xf32, #tpu.memory_space<vmem>>, vector<128x3xf32>
    %cst = arith.constant dense<0.000000e+00> : vector<8x3xf32>
    %2 = tpu.matmul %0, %1, %cst {dimension_numbers = #tpu.dot_dimension_numbers<[1], [0], [0], [1], [0, 0, 1, 1], [], []>} : vector<8x128xf32>, vector<128x3xf32>, vector<8x3xf32> -> vector<8x3xf32>
    %c0_3 = arith.constant 0 : index
    %c0_4 = arith.constant 0 : index
    %3 = vector.load %arg3[%c0_3, %c0_4] : memref<1x3xf32, #tpu.memory_space<vmem>>, vector<1x3xf32>
    %4 = vector.broadcast %3 : vector<1x3xf32> to vector<8x3xf32>
    %5 = arith.addf %2, %4 : vector<8x3xf32>
    %c0_5 = arith.constant 0 : index
    %c0_6 = arith.constant 0 : index
    %6 = vector.load %arg4[%c0_5, %c0_6] : memref<8x3xf32, #tpu.memory_space<vmem>>, vector<8x3xf32>
    tpu.vector_store %arg4[%c0_5, %c0_6], %5 {strides = array<i32>} : memref<8x3xf32, #tpu.memory_space<vmem>>, vector<8x3xf32>,
    return
  }
  func.func @transform_0(%arg0: i32) -> (i32, i32) {
    %c0_i32 = arith.constant 0 : i32
    %c0_i32_0 = arith.constant 0 : i32
    return %arg0, %c0_i32 : i32, i32
  }
  func.func @transform_1(%arg0: i32) -> (i32, i32) {
    %c0_i32 = arith.constant 0 : i32
    %c0_i32_0 = arith.constant 0 : i32
    %c0_i32_1 = arith.constant 0 : i32
    return %c0_i32, %c0_i32_0 : i32, i32
  }
  func.func @transform_2(%arg0: i32) -> (i32, i32) {
    %c0_i32 = arith.constant 0 : i32
    %c0_i32_0 = arith.constant 0 : i32
    %c0_i32_1 = arith.constant 0 : i32
    return %c0_i32, %c0_i32_0 : i32, i32
  }
  func.func @transform_3(%arg0: i32) -> (i32, i32) {
    %c0_i32 = arith.constant 0 : i32
    %c0_i32_0 = arith.constant 0 : i32
    return %arg0, %c0_i32 : i32, i32
  }
}

</mosaic_0001>

<bundles_post_ra>
// kernel: tpu_custom_call.1
= control target key start
LH: loop header
LB: loop body
LE: loop exit
PB: predicated region body
PF: predicated region fallthrough
CT: control target
= control target key end

     0   :  { %v169_v0 = vmov 0.0   ;;  %vm170_vm0 = vmmov 0   ;;  %vm108_vm1 = vcmask 23552   ;;  %s248_s1 = inlined_call_operand.vmem [shape: f32[128,3], index: 1, kind: input, shape index: {}]   ;;  %s249_s0 = inlined_call_operand.vmem [shape: f32[8,128], index: 0, kind: input, shape index: {}]   ;;  %s250_s2 = inlined_call_operand.vmem [shape: f32[1,3], index: 2, kind: input, shape index: {}]   ;;  %s251_s3 = inlined_call_operand.vmem [shape: f32[8,3], index: 3, kind: output, shape index: {}]  }
   0x1   :  { %132 = vmatprep.subr.mxu0 %v169_v0  ;;  %v30_v1 = vld [vmem:[%s248_s1 + $0x78] sm:$0xff]  ;;  %v29_v2 = vld [vmem:[%s248_s1 + $0x70] sm:$0xff]  ;;  %164 = vmatprep.mubr.msk.f32.mxu0 %vm170_vm0, %v169_v0  ;;  %v28_v3 = vld [vmem:[%s248_s1 + $0x68] sm:$0xff] }
   0x2   :  { %133 = vmatpush3.msra.mxu0 %v30_v1  ;;  %v27_v4 = vld [vmem:[%s248_s1 + $0x60] sm:$0xff]  ;;  %v26_v5 = vld [vmem:[%s248_s1 + $0x58] sm:$0xff]  ;;  %v25_v6 = vld [vmem:[%s248_s1 + $0x50] sm:$0xff] }
   0x3   :  { %134 = vmatprep.subr.mxu0 %v169_v0  ;;  %v24_v7 = vld [vmem:[%s248_s1 + $0x48] sm:$0xff]  ;;  %v23_v8 = vld [vmem:[%s248_s1 + $0x40] sm:$0xff]  ;;  %v22_v9 = vld [vmem:[%s248_s1 + $0x38] sm:$0xff] }
   0x4   :  { %135 = vmatpush3.msra.mxu0 %v29_v2  ;;  %v21_v10 = vld [vmem:[%s248_s1 + $0x30] sm:$0xff]  ;;  %v20_v11 = vld [vmem:[%s248_s1 + $0x28] sm:$0xff]  ;;  %v19_v12 = vld [vmem:[%s248_s1 + $0x20] sm:$0xff] }
   0x5   :  { %136 = vmatprep.subr.mxu0 %v169_v0  ;;  %v18_v13 = vld [vmem:[%s248_s1 + $0x18] sm:$0xff]  ;;  %v17_v14 = vld [vmem:[%s248_s1 + $0x10] sm:$0xff]  ;;  %v16_v15 = vld [vmem:[%s248_s1 + $0x8] sm:$0xff] }
   0x6   :  { %137 = vmatpush3.msra.mxu0 %v28_v3  ;;  %v15_v16 = vld [vmem:[%s248_s1] sm:$0xff] }
   0x7   :  { %138 = vmatprep.subr.mxu0 %v169_v0  ;;  %v14_v17 = vld [vmem:[%s249_s0] sm:$0xff] }
   0x8   :  { %139 = vmatpush3.msra.mxu0 %v27_v4  ;;  %v114_v18 = vld [vmem:[%s250_s2] ss:$0 sm:$0xff] }
   0x9   :  { %140 = vmatprep.subr.mxu0 %v169_v0 }
   0xa   :  { %141 = vmatpush3.msra.mxu0 %v26_v5 }
   0xb   :  { %142 = vmatprep.subr.mxu0 %v169_v0 }
   0xc   :  { %143 = vmatpush3.msra.mxu0 %v25_v6 }
   0xd   :  { %144 = vmatprep.subr.mxu0 %v169_v0 }
   0xe   :  { %145 = vmatpush3.msra.mxu0 %v24_v7 }
   0xf   :  { %146 = vmatprep.subr.mxu0 %v169_v0 }
  0x10   :  { %147 = vmatpush3.msra.mxu0 %v23_v8 }
  0x11   :  { %148 = vmatprep.subr.mxu0 %v169_v0 }
  0x12   :  { %149 = vmatpush3.msra.mxu0 %v22_v9 }
  0x13   :  { %150 = vmatprep.subr.mxu0 %v169_v0 }
  0x14   :  { %151 = vmatpush3.msra.mxu0 %v21_v10 }
  0x15   :  { %152 = vmatprep.subr.mxu0 %v169_v0 }
  0x16   :  { %153 = vmatpush3.msra.mxu0 %v20_v11 }
  0x17   :  { %154 = vmatprep.subr.mxu0 %v169_v0 }
  0x18   :  { %155 = vmatpush3.msra.mxu0 %v19_v12 }
  0x19   :  { %156 = vmatprep.subr.mxu0 %v169_v0 }
  0x1a   :  { %157 = vmatpush3.msra.mxu0 %v18_v13 }
  0x1b   :  { %158 = vmatprep.subr.mxu0 %v169_v0 }
  0x1c   :  { %159 = vmatpush3.msra.mxu0 %v17_v14 }
  0x1d   :  { %160 = vmatprep.subr.mxu0 %v169_v0 }
  0x1e   :  { %161 = vmatpush3.msra.mxu0 %v16_v15 }
  0x1f   :  { %162 = vmatprep.subr.mxu0 %v169_v0 }
  0x20   :  { %163 = vmatpush3.msra.mxu0 %v15_v16 }
  0x21   :  { %165 = vmatmul.mubr.f32.vlgmr.msra.gmra.mxu0 %v14_v17 }
  0xe1   :  { %v104_v19 = vpop.f32.mrf.mxu0 }
  0xe2   :  { %v105_v20 = vadd.f32 %v114_v18, %v104_v19 }
  0xe3   :  { %v166_v21 = vpop.f32.mrf.mxu0 }
  0xe4   :  { %109 = vst.msk [vmem:[%s251_s3] sm:$0xff] %vm108_vm1, %v105_v20 }

</bundles_post_ra>
